<compile_context>
chip_gen: v6e
topology: v6e:2x2x1
jax: 0.10.0
libtpu: 0.0.40
codegen_flags: <defaults>
</compile_context>

<pallas_src>
import jax
import jax.numpy as jnp
from jax.experimental import pallas as pl
from jax.experimental.pallas import tpu as pltpu

# ----------------------------- static config ---------------------------------
N, C, H, W = 2, 4, 16, 16          # NCHW input shape (PyTorch convention)
EXPAND = 2
CH = C * EXPAND                    # hidden (expanded) channels
HW = H * W                         # per-image spatial size
NHW = N * HW                       # lane dim: all images concatenated (512)
L_LAYERS = 4                       # number of fused inverted-residual blocks
LOG2_W = W.bit_length() - 1        # W is a power of two (cheap %/// by W)

NBIT = 8
# per-conv static quantization attributes (input_fraclen, weight_fraclen)
IFL1, WFL1 = 4, 6                  # 1x1 expand conv
IFL2, WFL2 = 4, 6                  # 3x3 depthwise conv
IFL3, WFL3 = 4, 6                  # 1x1 project conv
OUT_FRACLEN = WFL3 + IFL3
INT32_MAX = float((1 << 31) - 1)
APPLY_INT32_CLAMP = False          # stated no-op at these magnitudes; gated off

# fused per-stage constants (descale + ReLU6 + next-stage requant in one pass;
# exact because every scale factor is a power of two)
Q1 = 2.0 ** IFL1
QMIN_SYM = -(2.0 ** (NBIT - 1))
QMAX_SYM = 2.0 ** (NBIT - 1) - 1.0
FUSE12 = 2.0 ** (IFL2 - (WFL1 + IFL1))          # conv1 acc -> conv2 int input
CLIP12 = min(6.0 * 2.0 ** IFL2, 2.0 ** NBIT - 1.0)
FUSE23 = 2.0 ** (IFL3 - (WFL2 + IFL2))          # conv2 acc -> conv3 int input
CLIP23 = min(6.0 * 2.0 ** IFL3, 2.0 ** NBIT - 1.0)
INV_DESC3 = 2.0 ** -(WFL3 + IFL3)               # conv3 acc -> real value
CLIP_REAL = INT32_MAX / (2.0 ** OUT_FRACLEN)


# ------------------------------- kernel ---------------------------------------
def fused_blocks_kernel(x_ref, w1_ref, w2_ref, w3_ref, o_ref, act_ref):
    """One grid step == one inverted-residual block; activation carried in VMEM."""
    layer = pl.program_id(0)

    @pl.when(layer == 0)
    def _():
        act_ref[...] = x_ref[...]                 # load real-valued input once

    x = act_ref[...]                              # (C, NHW) f32, real-valued
    w1 = w1_ref[...]                              # (CH, C)  bf16 expand weights
    w2 = w2_ref[...]                              # (CH, 9)  f32  depthwise taps
    w3 = w3_ref[...]                              # (C, CH)  bf16 project weights

    # ---- Conv #1: 1x1 expand (C -> CH); one dense MXU matmul, bf16 operands ----
    xq = jnp.clip(jnp.round(x * Q1), QMIN_SYM, QMAX_SYM)
    yacc = jnp.dot(w1, xq.astype(jnp.bfloat16),
                   preferred_element_type=jnp.float32)          # (CH, NHW)
    # fused: descale by 2^-(WFL1+IFL1) + ReLU6 + conv2 input quantization
    yq = jnp.clip(jnp.round(yacc * FUSE12), 0.0, CLIP12)

    # ---- Conv #2: 3x3 depthwise, stride 1, pad 1 (lane rolls + edge masks) ----
    # Per-image pixel coordinates within the concatenated lane layout; the
    # masks also kill any tap that would wrap across an image boundary.
    pos = jax.lax.broadcasted_iota(jnp.int32, (1, NHW), 1)
    ww = jnp.bitwise_and(pos, W - 1)                            # w within image
    hh = jnp.bitwise_and(jnp.right_shift(pos, LOG2_W), H - 1)   # h within image
    hmask = {-1: hh >= 1, 0: None, 1: hh < H - 1}
    wmask = {-1: ww >= 1, 0: None, 1: ww < W - 1}
    tapw = [w2[:, t:t + 1] for t in range(9)]     # nine (CH,1) columns, one tile

    acc = jnp.zeros((CH, NHW), jnp.float32)
    tap = 0
    for dh in (-1, 0, 1):
        for dw in (-1, 0, 1):
            off = dh * W + dw                     # flattened-lane tap offset
            # v[p] == yq[p + off] (circular); edge masks zero invalid reads
            v = yq if off == 0 else pltpu.roll(yq, (-off) % NHW, 1)
            m = hmask[dh]
            if wmask[dw] is not None:
                m = wmask[dw] if m is None else (m & wmask[dw])
            if m is not None:
                v = jnp.where(m, v, 0.0)
            acc = acc + v * tapw[tap]
            tap += 1
    # fused: descale by 2^-(WFL2+IFL2) + ReLU6 + conv3 input quantization
    zq = jnp.clip(jnp.round(acc * FUSE23), 0.0, CLIP23)

    # ---- Conv #3: 1x1 project (CH -> C) + residual connection ----
    racc = jnp.dot(w3, zq.astype(jnp.bfloat16),
                   preferred_element_type=jnp.float32)          # (C, NHW)
    r = racc * INV_DESC3 + x
    if APPLY_INT32_CLAMP:                          # statically gated (no-op here)
        r = jnp.clip(r, -CLIP_REAL, CLIP_REAL)
    act_ref[...] = r                               # carry to the next block

    @pl.when(layer == pl.num_programs(0) - 1)
    def _():
        o_ref[...] = act_ref[...]                  # single HBM writeback at the end


# ------------------------------- wrapper ---------------------------------------
def _stack_layer_weights(w1_list, w2_list, w3_list):
    """Stack per-layer weights along a leading layer axis in kernel layout."""
    # conv1: (C, CH) -> (CH, C); conv3: (CH, C) -> (C, CH); both bf16 (exact ints)
    w1s = jnp.stack([w.T for w in w1_list]).astype(jnp.bfloat16)        # (L,CH,C)
    w3s = jnp.stack([w.T for w in w3_list]).astype(jnp.bfloat16)        # (L,C,CH)
    # depthwise: (3,3,CH) -> (CH, 9), tap = di*3 + dj; single clean VMEM tile
    w2s = jnp.stack([w.reshape(9, CH).T for w in w2_list])              # (L,CH,9)
    return w1s, w2s, w3s


def int_block_stack(x_nchw, w1_list, w2_list, w3_list):
    L = len(w1_list)
    # channel-major, lane-dense layout: rows = channel, lanes = (image, h, w)
    x2d = jnp.transpose(x_nchw, (1, 0, 2, 3)).reshape(C, NHW)
    w1s, w2s, w3s = _stack_layer_weights(w1_list, w2_list, w3_list)

    out2d = pl.pallas_call(
        fused_blocks_kernel,
        out_shape=jax.ShapeDtypeStruct((C, NHW), jnp.float32),
        grid_spec=pltpu.PrefetchScalarGridSpec(
            num_scalar_prefetch=0,
            grid=(L,),                                         # one step per block
            in_specs=[
                pl.BlockSpec((C, NHW), lambda l: (0, 0)),      # input, read at l=0
                pl.BlockSpec((None, CH, C), lambda l: (l, 0, 0)),   # streamed
                pl.BlockSpec((None, CH, 9), lambda l: (l, 0, 0)),   # per-layer
                pl.BlockSpec((None, C, CH), lambda l: (l, 0, 0)),   # weights
            ],
            out_specs=pl.BlockSpec((C, NHW), lambda l: (0, 0)),
            scratch_shapes=[pltpu.VMEM((C, NHW), jnp.float32)],  # activation carry
        ),
        input_output_aliases={0: 0},
        compiler_params=pltpu.CompilerParams(
            dimension_semantics=("arbitrary",),                 # layers are serial
            vmem_limit_bytes=16 * 1024 * 1024,                  # fits v5e/v6e/v7x
        ),
    )(x2d, w1s, w2s, w3s)

    out = out2d.reshape(C, N, H, W).transpose(1, 0, 2, 3)       # back to NCHW
    return out, OUT_FRACLEN


# ------------------------- plain-JAX reference ---------------------------------
def int_block_stack_ref(x_nchw, w1_list, w2_list, w3_list):
    """Original (un-fused) int-sim math in NCHW; validates the fused kernel."""
    def one_block(x, w1, w2, w3):                               # x: (C, H, W)
        xq = jnp.clip(jnp.round(x * 2.0 ** IFL1), QMIN_SYM, QMAX_SYM)
        y = jnp.einsum('ihw,io->ohw', xq, w1) / (2.0 ** (WFL1 + IFL1))
        y = jnp.clip(y, 0.0, 6.0)                               # ReLU6
        yq = jnp.clip(jnp.round(y * 2.0 ** IFL2), 0.0, 2.0 ** NBIT - 1.0)
        yp = jnp.pad(yq, ((0, 0), (1, 1), (1, 1)))
        acc = jnp.zeros((CH, H, W), jnp.float32)
        for di in range(3):
            for dj in range(3):
                acc = acc + yp[:, di:di + H, dj:dj + W] * w2[di, dj, :][:, None, None]
        z = jnp.clip(acc / (2.0 ** (WFL2 + IFL2)), 0.0, 6.0)
        zq = jnp.clip(jnp.round(z * 2.0 ** IFL3), 0.0, 2.0 ** NBIT - 1.0)
        r = jnp.einsum('ohw,oc->chw', zq, w3) / (2.0 ** (WFL3 + IFL3)) + x
        if APPLY_INT32_CLAMP:
            sc = 2.0 ** OUT_FRACLEN
            r = jnp.clip(r * sc, -INT32_MAX, INT32_MAX) / sc
        return r

    x = x_nchw
    for l in range(len(w1_list)):
        w1, w2, w3 = w1_list[l], w2_list[l], w3_list[l]
        x = jax.vmap(lambda xi: one_block(xi, w1, w2, w3))(x)
    return x


# --------------------------------- main -----------------------------------------
if __name__ == "__main__":
    key = jax.random.PRNGKey(0)
    keys = jax.random.split(key, 1 + 3 * L_LAYERS)

    # input in PyTorch NCHW (the wrapper reshapes to the channel-major layout)
    x_nchw = jax.random.normal(keys[0], (N, C, H, W), dtype=jnp.float32)

    def quantize_weight(w, wfl):
        return jnp.clip(jnp.round(w * (2.0 ** wfl)), -128.0, 127.0)

    # per-layer conv weights stored as integer-valued floats (int-inference)
    w1_list, w2_list, w3_list = [], [], []
    for l in range(L_LAYERS):
        k1, k2, k3 = keys[1 + 3 * l: 4 + 3 * l]
        w1_list.append(quantize_weight(
            jax.random.normal(k1, (C, CH), jnp.float32) * 0.3, WFL1))
        w2_list.append(quantize_weight(
            jax.random.normal(k2, (3, 3, CH), jnp.float32) * 0.3, WFL2))
        w3_list.append(quantize_weight(
            jax.random.normal(k3, (CH, C), jnp.float32) * 0.3, WFL3))

    out, out_fraclen = int_block_stack(x_nchw, w1_list, w2_list, w3_list)
    out = jax.block_until_ready(out)

    ref = int_block_stack_ref(x_nchw, w1_list, w2_list, w3_list)
    assert out.shape == (N, C, H, W)
    assert jnp.allclose(out, ref, rtol=1e-5, atol=1e-5), "mismatch vs reference"

    print("KERNEL_OK")
</pallas_src>

<mosaic_0001>
module attributes {stable_mosaic.version = 11 : i64} {
  func.func @fused_blocks_kernel(%arg0: i32, %arg1: memref<4x512xf32, #tpu.memory_space<vmem>>, %arg2: memref<1x8x4xbf16, #tpu.memory_space<vmem>>, %arg3: memref<1x8x9xf32, #tpu.memory_space<vmem>>, %arg4: memref<1x4x8xbf16, #tpu.memory_space<vmem>>, %arg5: memref<4x512xf32, #tpu.memory_space<vmem>>, %arg6: memref<4x512xf32, #tpu.memory_space<vmem>>) attributes {dimension_semantics = [#tpu.dimension_semantics<arbitrary>], iteration_bounds = array<i64: 4>, scalar_prefetch = 0 : i64, scratch_operands = 1 : i64, tpu.core_type = #tpu.core_type<tc>, window_params = [{pipeline_mode = #tpu.pipeline_mode<synchronous>, transform_indices = @transform_0, window_bounds = array<i64: 4, 512>}, {transform_indices = @transform_1, window_bounds = array<i64: 1, 8, 4>}, {transform_indices = @transform_2, window_bounds = array<i64: 1, 8, 9>}, {transform_indices = @transform_3, window_bounds = array<i64: 1, 4, 8>}, {pipeline_mode = #tpu.pipeline_mode<synchronous>, transform_indices = @transform_4, window_bounds = array<i64: 4, 512>}]} {
    %c0_i32 = arith.constant 0 : i32
    %0 = arith.cmpi eq, %arg0, %c0_i32 : i32
    %1 = arith.extui %0 : i1 to i32
    %c0_i32_0 = arith.constant 0 : i32
    %2 = arith.cmpi ne, %1, %c0_i32_0 : i32
    scf.if %2 {
      %c0_40 = arith.constant 0 : index
      %c0_41 = arith.constant 0 : index
      %138 = vector.load %arg1[%c0_40, %c0_41] : memref<4x512xf32, #tpu.memory_space<vmem>>, vector<4x512xf32>
      %c0_42 = arith.constant 0 : index
      %c0_43 = arith.constant 0 : index
      %139 = vector.load %arg6[%c0_42, %c0_43] : memref<4x512xf32, #tpu.memory_space<vmem>>, vector<4x512xf32>
      tpu.vector_store %arg6[%c0_42, %c0_43], %138 {strides = array<i32>} : memref<4x512xf32, #tpu.memory_space<vmem>>, vector<4x512xf32>,
    } else {
    }
    %c0 = arith.constant 0 : index
    %c0_1 = arith.constant 0 : index
    %3 = vector.load %arg6[%c0, %c0_1] : memref<4x512xf32, #tpu.memory_space<vmem>>, vector<4x512xf32>
    %c0_2 = arith.constant 0 : index
    %c0_3 = arith.constant 0 : index
    %c0_4 = arith.constant 0 : index
    %4 = vector.load %arg2[%c0_2, %c0_3, %c0_4] : memref<1x8x4xbf16, #tpu.memory_space<vmem>>, vector<1x8x4xbf16>
    %5 = vector.shape_cast %4 : vector<1x8x4xbf16> to vector<8x4xbf16>
    %c0_5 = arith.constant 0 : index
    %c0_6 = arith.constant 0 : index
    %c0_7 = arith.constant 0 : index
    %6 = vector.load %arg3[%c0_5, %c0_6, %c0_7] : memref<1x8x9xf32, #tpu.memory_space<vmem>>, vector<1x8x9xf32>
    %7 = vector.shape_cast %6 : vector<1x8x9xf32> to vector<8x9xf32>
    %c0_8 = arith.constant 0 : index
    %c0_9 = arith.constant 0 : index
    %c0_10 = arith.constant 0 : index
    %8 = vector.load %arg4[%c0_8, %c0_9, %c0_10] : memref<1x4x8xbf16, #tpu.memory_space<vmem>>, vector<1x4x8xbf16>
    %9 = vector.shape_cast %8 : vector<1x4x8xbf16> to vector<4x8xbf16>
    %cst = arith.constant 1.600000e+01 : f32
    %10 = vector.broadcast %cst : f32 to vector<4x512xf32>
    %11 = arith.mulf %3, %10 : vector<4x512xf32>
    %12 = math.roundeven %11 : vector<4x512xf32>
    %cst_11 = arith.constant -1.280000e+02 : f32
    %cst_12 = arith.constant 1.270000e+02 : f32
    %13 = vector.broadcast %cst_11 : f32 to vector<4x512xf32>
    %14 = arith.maximumf %13, %12 : vector<4x512xf32>
    %15 = vector.broadcast %cst_12 : f32 to vector<4x512xf32>
    %16 = arith.minimumf %15, %14 : vector<4x512xf32>
    %17 = arith.truncf %16 : vector<4x512xf32> to vector<4x512xbf16>
    %cst_13 = arith.constant dense<0.000000e+00> : vector<8x512xf32>
    %18 = tpu.matmul %5, %17, %cst_13 {dimension_numbers = #tpu.dot_dimension_numbers<[1], [0], [0], [1], [0, 0, 1, 1], [], []>} : vector<8x4xbf16>, vector<4x512xbf16>, vector<8x512xf32> -> vector<8x512xf32>
    %cst_14 = arith.constant 1.562500e-02 : f32
    %19 = vector.broadcast %cst_14 : f32 to vector<8x512xf32>
    %20 = arith.mulf %18, %19 : vector<8x512xf32>
    %21 = math.roundeven %20 : vector<8x512xf32>
    %cst_15 = arith.constant 0.000000e+00 : f32
    %cst_16 = arith.constant 9.600000e+01 : f32
    %22 = vector.broadcast %cst_15 : f32 to vector<8x512xf32>
    %23 = arith.maximumf %22, %21 : vector<8x512xf32>
    %24 = vector.broadcast %cst_16 : f32 to vector<8x512xf32>
    %25 = arith.minimumf %24, %23 : vector<8x512xf32>
    %26 = tpu.iota {dimensions = array<i32: 1>} : vector<1x512xi32>
    %c15_i32 = arith.constant 15 : i32
    %27 = vector.broadcast %c15_i32 : i32 to vector<1x512xi32>
    %28 = arith.andi %26, %27 : vector<1x512xi32>
    %c4_i32 = arith.constant 4 : i32
    %29 = vector.broadcast %c4_i32 : i32 to vector<1x512xi32>
    %30 = arith.shrsi %26, %29 : vector<1x512xi32>
    %c15_i32_17 = arith.constant 15 : i32
    %31 = vector.broadcast %c15_i32_17 : i32 to vector<1x512xi32>
    %32 = arith.andi %30, %31 : vector<1x512xi32>
    %c1_i32 = arith.constant 1 : i32
    %33 = vector.broadcast %c1_i32 : i32 to vector<1x512xi32>
    %34 = arith.cmpi sge, %32, %33 : vector<1x512xi32>
    %c15_i32_18 = arith.constant 15 : i32
    %35 = vector.broadcast %c15_i32_18 : i32 to vector<1x512xi32>
    %36 = arith.cmpi slt, %32, %35 : vector<1x512xi32>
    %c1_i32_19 = arith.constant 1 : i32
    %37 = vector.broadcast %c1_i32_19 : i32 to vector<1x512xi32>
    %38 = arith.cmpi sge, %28, %37 : vector<1x512xi32>
    %c15_i32_20 = arith.constant 15 : i32
    %39 = vector.broadcast %c15_i32_20 : i32 to vector<1x512xi32>
    %40 = arith.cmpi slt, %28, %39 : vector<1x512xi32>
    %41 = vector.extract_strided_slice %7 {offsets = [0, 0], sizes = [8, 1], strides = [1, 1]} : vector<8x9xf32> to vector<8x1xf32>
    %42 = vector.extract_strided_slice %7 {offsets = [0, 1], sizes = [8, 1], strides = [1, 1]} : vector<8x9xf32> to vector<8x1xf32>
    %43 = vector.extract_strided_slice %7 {offsets = [0, 2], sizes = [8, 1], strides = [1, 1]} : vector<8x9xf32> to vector<8x1xf32>
    %44 = vector.extract_strided_slice %7 {offsets = [0, 3], sizes = [8, 1], strides = [1, 1]} : vector<8x9xf32> to vector<8x1xf32>
    %45 = vector.extract_strided_slice %7 {offsets = [0, 4], sizes = [8, 1], strides = [1, 1]} : vector<8x9xf32> to vector<8x1xf32>
    %46 = vector.extract_strided_slice %7 {offsets = [0, 5], sizes = [8, 1], strides = [1, 1]} : vector<8x9xf32> to vector<8x1xf32>
    %47 = vector.extract_strided_slice %7 {offsets = [0, 6], sizes = [8, 1], strides = [1, 1]} : vector<8x9xf32> to vector<8x1xf32>
    %48 = vector.extract_strided_slice %7 {offsets = [0, 7], sizes = [8, 1], strides = [1, 1]} : vector<8x9xf32> to vector<8x1xf32>
    %49 = vector.extract_strided_slice %7 {offsets = [0, 8], sizes = [8, 1], strides = [1, 1]} : vector<8x9xf32> to vector<8x1xf32>
    %cst_21 = arith.constant 0.000000e+00 : f32
    %50 = vector.broadcast %cst_21 : f32 to vector<8x512xf32>
    %c17_i32 = arith.constant 17 : i32
    %51 = tpu.dynamic_rotate %25 by %c17_i32 dim 1 : vector<8x512xf32>, i32 -> vector<8x512xf32>
    %52 = arith.andi %34, %38 : vector<1x512xi1>
    %cst_22 = arith.constant 0.000000e+00 : f32
    %53 = vector.shape_cast %52 : vector<1x512xi1> to vector<1x512xi1>
    %54 = vector.broadcast %53 : vector<1x512xi1> to vector<8x512xi1>
    %55 = vector.broadcast %cst_22 : f32 to vector<8x512xf32>
    %56 = arith.select %54, %51, %55 : vector<8x512xi1>, vector<8x512xf32>
    %57 = vector.broadcast %41 : vector<8x1xf32> to vector<8x512xf32>
    %58 = arith.mulf %56, %57 : vector<8x512xf32>
    %59 = arith.addf %50, %58 : vector<8x512xf32>
    %c16_i32 = arith.constant 16 : i32
    %60 = tpu.dynamic_rotate %25 by %c16_i32 dim 1 : vector<8x512xf32>, i32 -> vector<8x512xf32>
    %cst_23 = arith.constant 0.000000e+00 : f32
    %61 = vector.shape_cast %34 : vector<1x512xi1> to vector<1x512xi1>
    %62 = vector.broadcast %61 : vector<1x512xi1> to vector<8x512xi1>
    %63 = vector.broadcast %cst_23 : f32 to vector<8x512xf32>
    %64 = arith.select %62, %60, %63 : vector<8x512xi1>, vector<8x512xf32>
    %65 = vector.broadcast %42 : vector<8x1xf32> to vector<8x512xf32>
    %66 = arith.mulf %64, %65 : vector<8x512xf32>
    %67 = arith.addf %59, %66 : vector<8x512xf32>
    %c15_i32_24 = arith.constant 15 : i32
    %68 = tpu.dynamic_rotate %25 by %c15_i32_24 dim 1 : vector<8x512xf32>, i32 -> vector<8x512xf32>
    %69 = arith.andi %34, %40 : vector<1x512xi1>
    %cst_25 = arith.constant 0.000000e+00 : f32
    %70 = vector.shape_cast %69 : vector<1x512xi1> to vector<1x512xi1>
    %71 = vector.broadcast %70 : vector<1x512xi1> to vector<8x512xi1>
    %72 = vector.broadcast %cst_25 : f32 to vector<8x512xf32>
    %73 = arith.select %71, %68, %72 : vector<8x512xi1>, vector<8x512xf32>
    %74 = vector.broadcast %43 : vector<8x1xf32> to vector<8x512xf32>
    %75 = arith.mulf %73, %74 : vector<8x512xf32>
    %76 = arith.addf %67, %75 : vector<8x512xf32>
    %c1_i32_26 = arith.constant 1 : i32
    %77 = tpu.dynamic_rotate %25 by %c1_i32_26 dim 1 : vector<8x512xf32>, i32 -> vector<8x512xf32>
    %cst_27 = arith.constant 0.000000e+00 : f32
    %78 = vector.shape_cast %38 : vector<1x512xi1> to vector<1x512xi1>
    %79 = vector.broadcast %78 : vector<1x512xi1> to vector<8x512xi1>
    %80 = vector.broadcast %cst_27 : f32 to vector<8x512xf32>
    %81 = arith.select %79, %77, %80 : vector<8x512xi1>, vector<8x512xf32>
    %82 = vector.broadcast %44 : vector<8x1xf32> to vector<8x512xf32>
    %83 = arith.mulf %81, %82 : vector<8x512xf32>
    %84 = arith.addf %76, %83 : vector<8x512xf32>
    %85 = vector.broadcast %45 : vector<8x1xf32> to vector<8x512xf32>
    %86 = arith.mulf %25, %85 : vector<8x512xf32>
    %87 = arith.addf %84, %86 : vector<8x512xf32>
    %c511_i32 = arith.constant 511 : i32
    %88 = tpu.dynamic_rotate %25 by %c511_i32 dim 1 : vector<8x512xf32>, i32 -> vector<8x512xf32>
    %cst_28 = arith.constant 0.000000e+00 : f32
    %89 = vector.shape_cast %40 : vector<1x512xi1> to vector<1x512xi1>
    %90 = vector.broadcast %89 : vector<1x512xi1> to vector<8x512xi1>
    %91 = vector.broadcast %cst_28 : f32 to vector<8x512xf32>
    %92 = arith.select %90, %88, %91 : vector<8x512xi1>, vector<8x512xf32>
    %93 = vector.broadcast %46 : vector<8x1xf32> to vector<8x512xf32>
    %94 = arith.mulf %92, %93 : vector<8x512xf32>
    %95 = arith.addf %87, %94 : vector<8x512xf32>
    %c497_i32 = arith.constant 497 : i32
    %96 = tpu.dynamic_rotate %25 by %c497_i32 dim 1 : vector<8x512xf32>, i32 -> vector<8x512xf32>
    %97 = arith.andi %36, %38 : vector<1x512xi1>
    %cst_29 = arith.constant 0.000000e+00 : f32
    %98 = vector.shape_cast %97 : vector<1x512xi1> to vector<1x512xi1>
    %99 = vector.broadcast %98 : vector<1x512xi1> to vector<8x512xi1>
    %100 = vector.broadcast %cst_29 : f32 to vector<8x512xf32>
    %101 = arith.select %99, %96, %100 : vector<8x512xi1>, vector<8x512xf32>
    %102 = vector.broadcast %47 : vector<8x1xf32> to vector<8x512xf32>
    %103 = arith.mulf %101, %102 : vector<8x512xf32>
    %104 = arith.addf %95, %103 : vector<8x512xf32>
    %c496_i32 = arith.constant 496 : i32
    %105 = tpu.dynamic_rotate %25 by %c496_i32 dim 1 : vector<8x512xf32>, i32 -> vector<8x512xf32>
    %cst_30 = arith.constant 0.000000e+00 : f32
    %106 = vector.shape_cast %36 : vector<1x512xi1> to vector<1x512xi1>
    %107 = vector.broadcast %106 : vector<1x512xi1> to vector<8x512xi1>
    %108 = vector.broadcast %cst_30 : f32 to vector<8x512xf32>
    %109 = arith.select %107, %105, %108 : vector<8x512xi1>, vector<8x512xf32>
    %110 = vector.broadcast %48 : vector<8x1xf32> to vector<8x512xf32>
    %111 = arith.mulf %109, %110 : vector<8x512xf32>
    %112 = arith.addf %104, %111 : vector<8x512xf32>
    %c495_i32 = arith.constant 495 : i32
    %113 = tpu.dynamic_rotate %25 by %c495_i32 dim 1 : vector<8x512xf32>, i32 -> vector<8x512xf32>
    %114 = arith.andi %36, %40 : vector<1x512xi1>
    %cst_31 = arith.constant 0.000000e+00 : f32
    %115 = vector.shape_cast %114 : vector<1x512xi1> to vector<1x512xi1>
    %116 = vector.broadcast %115 : vector<1x512xi1> to vector<8x512xi1>
    %117 = vector.broadcast %cst_31 : f32 to vector<8x512xf32>
    %118 = arith.select %116, %113, %117 : vector<8x512xi1>, vector<8x512xf32>
    %119 = vector.broadcast %49 : vector<8x1xf32> to vector<8x512xf32>
    %120 = arith.mulf %118, %119 : vector<8x512xf32>
    %121 = arith.addf %112, %120 : vector<8x512xf32>
    %cst_32 = arith.constant 1.562500e-02 : f32
    %122 = vector.broadcast %cst_32 : f32 to vector<8x512xf32>
    %123 = arith.mulf %121, %122 : vector<8x512xf32>
    %124 = math.roundeven %123 : vector<8x512xf32>
    %cst_33 = arith.constant 0.000000e+00 : f32
    %cst_34 = arith.constant 9.600000e+01 : f32
    %125 = vector.broadcast %cst_33 : f32 to vector<8x512xf32>
    %126 = arith.maximumf %125, %124 : vector<8x512xf32>
    %127 = vector.broadcast %cst_34 : f32 to vector<8x512xf32>
    %128 = arith.minimumf %127, %126 : vector<8x512xf32>
    %129 = arith.truncf %128 : vector<8x512xf32> to vector<8x512xbf16>
    %cst_35 = arith.constant dense<0.000000e+00> : vector<4x512xf32>
    %130 = tpu.matmul %9, %129, %cst_35 {dimension_numbers = #tpu.dot_dimension_numbers<[1], [0], [0], [1], [0, 0, 1, 1], [], []>} : vector<4x8xbf16>, vector<8x512xbf16>, vector<4x512xf32> -> vector<4x512xf32>
    %cst_36 = arith.constant 9.765625E-4 : f32
    %131 = vector.broadcast %cst_36 : f32 to vector<4x512xf32>
    %132 = arith.mulf %130, %131 : vector<4x512xf32>
    %133 = arith.addf %132, %3 : vector<4x512xf32>
    %c0_37 = arith.constant 0 : index
    %c0_38 = arith.constant 0 : index
    %134 = vector.load %arg6[%c0_37, %c0_38] : memref<4x512xf32, #tpu.memory_space<vmem>>, vector<4x512xf32>
    tpu.vector_store %arg6[%c0_37, %c0_38], %133 {strides = array<i32>} : memref<4x512xf32, #tpu.memory_space<vmem>>, vector<4x512xf32>,
    %c3_i32 = arith.constant 3 : i32
    %135 = arith.cmpi eq, %arg0, %c3_i32 : i32
    %136 = arith.extui %135 : i1 to i32
    %c0_i32_39 = arith.constant 0 : i32
    %137 = arith.cmpi ne, %136, %c0_i32_39 : i32
    scf.if %137 {
      %c0_40 = arith.constant 0 : index
      %c0_41 = arith.constant 0 : index
      %138 = vector.load %arg6[%c0_40, %c0_41] : memref<4x512xf32, #tpu.memory_space<vmem>>, vector<4x512xf32>
      %c0_42 = arith.constant 0 : index
      %c0_43 = arith.constant 0 : index
      %139 = vector.load %arg5[%c0_42, %c0_43] : memref<4x512xf32, #tpu.memory_space<vmem>>, vector<4x512xf32>
      tpu.vector_store %arg5[%c0_42, %c0_43], %138 {strides = array<i32>} : memref<4x512xf32, #tpu.memory_space<vmem>>, vector<4x512xf32>,
    } else {
    }
    return
  }
  func.func @transform_0(%arg0: i32) -> (i32, i32) {
    %c0_i32 = arith.constant 0 : i32
    %c0_i32_0 = arith.constant 0 : i32
    %c0_i32_1 = arith.constant 0 : i32
    return %c0_i32, %c0_i32_0 : i32, i32
  }
  func.func @transform_1(%arg0: i32) -> (i32, i32, i32) {
    %c0_i32 = arith.constant 0 : i32
    %c0_i32_0 = arith.constant 0 : i32
    %c0_i32_1 = arith.constant 0 : i32
    return %arg0, %c0_i32, %c0_i32_0 : i32, i32, i32
  }
  func.func @transform_2(%arg0: i32) -> (i32, i32, i32) {
    %c0_i32 = arith.constant 0 : i32
    %c0_i32_0 = arith.constant 0 : i32
    %c0_i32_1 = arith.constant 0 : i32
    return %arg0, %c0_i32, %c0_i32_0 : i32, i32, i32
  }
  func.func @transform_3(%arg0: i32) -> (i32, i32, i32) {
    %c0_i32 = arith.constant 0 : i32
    %c0_i32_0 = arith.constant 0 : i32
    %c0_i32_1 = arith.constant 0 : i32
    return %arg0, %c0_i32, %c0_i32_0 : i32, i32, i32
  }
  func.func @transform_4(%arg0: i32) -> (i32, i32) {
    %c0_i32 = arith.constant 0 : i32
    %c0_i32_0 = arith.constant 0 : i32
    %c0_i32_1 = arith.constant 0 : i32
    return %c0_i32, %c0_i32_0 : i32, i32
  }
}

</mosaic_0001>

<bundles_post_ra>
// kernel: tpu_custom_call.1
= control target key start
LH: loop header
LB: loop body
LE: loop exit
PB: predicated region body
PF: predicated region fallthrough
CT: control target
= control target key end

     0   :  { %9 = vsyncpa [#allocation4], 0  ;;  %s1805_s0 = inlined_call_operand.hbm [shape: f32[4,512], index: 0, kind: input, shape index: {}, may-alias: {0,4}]   ;;  %s1806_s1 = inlined_call_operand.vmem [shape: bf16[4,8,4], index: 1, kind: input, shape index: {}]   ;;  %s1807_s2 = inlined_call_operand.vmem [shape: f32[4,8,9], index: 2, kind: input, shape index: {}]   ;;  %s1808_s3 = inlined_call_operand.vmem [shape: bf16[4,4,8], index: 3, kind: input, shape index: {}]   ;;  %s1809_s4 = inlined_call_operand.hbm [shape: f32[4,512], index: 4, kind: output, shape index: {}, may-alias: {0,4}]  }
   0x1   :  { %10 = vsyncpa [#allocation5], 0  ;;  %s1233_s15 = smov 0  }
   0x2 LB: > { %s1239_s16 = sadd.s32 4294967295, %s1187_s15   ;;  %p967_p0 = scmp.ge.s32.totalorder %s1187_s15, 1  ;;  %s1187_s15 = sphi %s1233_s15, %s16_s15  }
   0x3   : > { %p141_p1 = scmp.lt.s32.totalorder %s1187_s15, 5  ;;  %p968_p2 = scmp.ne.s32.totalorder %s1239_s16, 0 }
   0x4   : > { %p1081_p4 = scmp.eq.s32.totalorder %s1239_s16, 0  ;;  %s1189_s18 = smov [#allocation3]  }
   0x5   : > { %p1244_p3 = pnand %p967_p0, %p141_p1  ;;  %s154_s19 = sshll.u32 %s1189_s18, 4  ;;  %s155_s19 = int_to_ptr.vmem [resolvable:$true] %s154_s19 }
   0x6   : > { %s1134_s20 = scalar_lea.vmem %s155_s19, 256  ;;  %p1142_p11 = scmp.lt.s32.totalorder %s155_s19, %s155_s19 }
   0x7   : > { %p1077_p5 = pneg %p1244_p3  ;;  %p1135_p8 = scmp.ne.s32.totalorder %s155_s19, %s1134_s20 }
   0x8   : > { %p1143_p12 = scmp.lt.s32.totalorder %s1134_s20, %s1134_s20 }
   0x9   : > { %p1078_p6 = pnand %p1081_p4, %p1077_p5 }
   0xa   : > { %p1144_p13 = por %p1143_p12, %p1142_p11 }
   0xb   : > { %p1125_p7 = pneg %p1078_p6 }
   0xd   : > { %p1137_p9 = pnand %p1135_p8, %p1125_p7 }
   0xf   : > { %p1138_p10 = pneg %p1137_p9 }
  0x11   : > { %p1145_p0 = pnand %p1144_p13, %p1138_p10 }
  0x13   : > { %1148 = shalt.err (!%p1145_p0)
}
  0x14   : > { %1080 = dma.hbm_to_vmem [thread:$0]  (!%p1078_p6), %s1805_s0, 256, %s155_s19, [#allocation4]  }
  0x15   : > { %188 = sbr.rel (%p1244_p3) target bundleno = 718 (0x2ce), region = 36 }
  0x1a   : > { %1178 = dma.done.wait (%p1081_p4), [#allocation4], 256  }
  0x1b   : > { %1180 = vsyncadd (%p1081_p4), [#allocation4], 4294967040  ;;  %p216_p1 = scmp.lt.s32.totalorder %s1239_s16, 3 }
  0x1d   : > { %s217_s23 = scalar_select %p216_p1, %s1239_s16, 3 }
  0x1e   : > { %232 = sbr.rel (%p968_p2) target bundleno = 37 (0x25), region = 44 }
  0x1f   : > { %s972_s24 = sshll.u32 %s217_s23, 2  ;;  %s973_s25 = sshll.u32 %s217_s23, 3 }
  0x20   : > { %s1267_s28 = scalar_lea.vmem %s1806_s1, %s972_s24  ;;  %s223_s5 = scalar_lea.vmem %s1807_s2, %s973_s25 }
  0x21   : > { %s974_s6 = sshll.u32 %s217_s23, 1 }
  0x22   : > { %s1275_s9 = scalar_lea.vmem %s1808_s3, %s974_s6 }
  0x23   : > { %v233_v0 = vld [vmem:[#allocation3] sm:$0xff]  ;;  %v234_v1 = vld [vmem:[#allocation3 + $0x8] sm:$0xff] }
  0x24   : > { %235 = vst [vmem:[#allocation2] sm:$0xff] %v233_v0  ;;  %236 = vst [vmem:[#allocation2 + $0x8] sm:$0xff] %v234_v1 }
  0x25 PF: > { %v1190_v6 = vmov 0   ;;  %v1285_v7 = vld [vmem:[%s223_s5] sm:$0xff]  ;;  %v1191_v9 = vmov 2   ;;  %v1192_v18 = vmov 1   ;;  %v1193_v20 = vmov 6   ;;  %s1199_s10 = smov 17  }
  0x26   : > { %309 = vmatprep.mubr.bf16.mxu0 %v1190_v6  ;;  %350 = vmatprep.mubr.bf16.mxu1 %v1190_v6  ;;  %v1194_v26 = vmov 3   ;;  %vm264_vm2 = vcmask 1041408   ;;  %v1195_v34 = vmov 4   ;;  %v239_v39 = vld [vmem:[%s1267_s28] sm:$0xf]  ;;  %vm260_vm3 = vcmask 31744  }
  0x27   : > { %1112 = vset.pattern.permute.xlu0 %v1190_v6  ;;  %1114 = vset.pattern.permute.xlu1 %v1191_v9  ;;  %v1196_v40 = vmov 5   ;;  %v1197_v41 = vmov 7   ;;  %v1198_v42 = vmov 8   ;;  %s1200_s11 = smov 15   ;;  %s1201_s12 = smov 16  }
  0x28   : > { %439 = vperm.xlu0 %1112, %v1285_v7   ;;  %517 = vperm.xlu1 %1114, %v1285_v7   ;;  %s1202_s13 = smov 1   ;;  %s1203_s14 = smov 127  }
  0x29   : > { %s1204_s17 = smov 112   ;;  %s1205_s18 = smov 113  }
  0x2a   : > { %s1206_s19 = smov 111   ;;  %p984_p2 = scmp.ne.s32.totalorder %s1239_s16, 3 }
  0x2b   : > { %v1279_v2 = vld [vmem:[#allocation2] sm:$0xff]  ;;  %v1281_v3 = vld [vmem:[#allocation2 + $0x8] sm:$0xff] }
  0x2c   : > { %v242_v4 = vmul.f32 16.0, %v1279_v2  ;;  %v243_v5 = vmul.f32 16.0, %v1281_v3  ;;  %1113 = vset.pattern.permute.xlu0 %v1192_v18  ;;  %1118 = vset.pattern.permute.xlu1 %v1193_v20 }
  0x2d   : > { %476 = vperm.xlu0 %1113, %v1285_v7   ;;  %644 = vperm.xlu1 %1118, %v1285_v7  }
  0x2e   : > { %v991_v8 = vcvt.f32.s32 %v242_v4  ;;  %v989_v10 = vand.u32 2147483647, %v242_v4  ;;  %v999_v11 = vcvt.f32.s32 %v243_v5  ;;  %v994_v13 = vand.u32 2147483648, %v242_v4 }
  0x2f   : > { %v997_v14 = vand.u32 2147483647, %v243_v5  ;;  %v1002_v16 = vand.u32 2147483648, %v243_v5 }
  0x30   : > { %v992_v12 = vcvt.s32.f32 %v991_v8  ;;  %v1000_v15 = vcvt.s32.f32 %v999_v11  ;;  %vm990_vm0 = vcmp.lt.f32.partialorder %v989_v10, 8388608.0 }
  0x31   : > { %vm998_vm1 = vcmp.lt.f32.partialorder %v997_v14, 8388608.0  ;;  %1115 = vset.pattern.permute.xlu0 %v1194_v26  ;;  %1119 = vset.pattern.permute.xlu1 %v1197_v41 }
  0x32   : > { %v993_v17 = vand.u32 2147483647, %v992_v12  ;;  %v1001_v19 = vand.u32 2147483647, %v1000_v15  ;;  %554 = vperm.xlu0 %1115, %v1285_v7   ;;  %681 = vperm.xlu1 %1119, %v1285_v7  }
  0x34   : > { %v995_v21 = vor.u32 %v994_v13, %v993_v17  ;;  %v1003_v22 = vor.u32 %v1002_v16, %v1001_v19 }
  0x36   : > { %v996_v23 = vsel %vm990_vm0, %v995_v21, %v242_v4  ;;  %v1004_v25 = vsel %vm998_vm1, %v1003_v22, %v243_v5  ;;  %1116 = vset.pattern.permute.xlu0 %v1195_v34 }
  0x37   : > { %v246_v24 = vmax.f32 %v996_v23, -128.0  ;;  %v247_v27 = vmax.f32 %v1004_v25, -128.0  ;;  %566 = vperm.xlu0 %1116, %v1285_v7  }
  0x39   : > { %v248_v28 = vmin.f32 %v246_v24, 127.0  ;;  %v249_v29 = vmin.f32 %v247_v27, 127.0 }
  0x3b   : > { %v252_v30 = vcombine.high %v248_v28, %v248_v28  ;;  %v256_v31 = vpack.c.bf16 %v248_v28, %v248_v28  ;;  %v253_v32 = vcombine.high %v249_v29, %v249_v29  ;;  %v258_v33 = vpack.c.bf16 %v249_v29, %v249_v29  ;;  %1117 = vset.pattern.permute.xlu0 %v1196_v40 }
  0x3c   : > { %603 = vperm.xlu0 %1117, %v1285_v7  }
  0x3d   : > { %v257_v35 = vpack.c.bf16 %v252_v30, %v252_v30  ;;  %v266_v36 = vsel %vm264_vm2, %v256_v31, 0  ;;  %v259_v37 = vpack.c.bf16 %v253_v32, %v253_v32  ;;  %v272_v38 = vsel %vm264_vm2, %v258_v33, 0 }
  0x3f   : > { %976 = vmatprep.subr.msk.bf16.mxu0 %vm264_vm2, %v257_v35  ;;  %978 = vmatprep.subr.msk.bf16.mxu1 %vm264_vm2, %v259_v37 }
  0x40   : > { %292 = vmatpush1.bf16.msra.mxu0 %v266_v36  ;;  %333 = vmatpush1.bf16.msra.mxu1 %v272_v38 }
  0x41   : > { %1120 = vset.pattern.permute.xlu0 %v1198_v42 }
  0x42   : > { %722 = vperm.xlu0 %1120, %v1285_v7  }
  0x43   : > { %977 = vmatmul.mubr.msk.bf16.vlgmr.msra.gmra.mxu0 %vm260_vm3, %v239_v39  ;;  %979 = vmatmul.mubr.msk.bf16.vlgmr.msra.gmra.mxu1 %vm260_vm3, %v239_v39 }
  0x44   : > { %802 = vmatprep.mubr.bf16.mxu0 %v1190_v6  ;;  %843 = vmatprep.mubr.bf16.mxu1 %v1190_v6 }
  0xa3   : > { %v1353_v29 = vpop.permute.xlu0 %439  ;;  %v1357_v31 = vpop.permute.xlu1 %517 }
  0xa8   : > { %v1355_v30 = vpop.permute.xlu0 %476  ;;  %v1361_v33 = vpop.permute.xlu1 %644 }
  0xad   : > { %v1359_v32 = vpop.permute.xlu0 %554  ;;  %v1365_v36 = vpop.permute.xlu1 %681 }
  0xb2   : > { %v567_v34 = vpop.permute.xlu0 %566 }
  0xb7   : > { %v1363_v35 = vpop.permute.xlu0 %603 }
  0xbd   : > { %v1367_v37 = vpop.permute.xlu0 %722 }
 0x103   : > { %v311_v43 = vpop.f32.mrf.mxu0  ;;  %v352_v45 = vpop.f32.mrf.mxu1 }
 0x104   : > { %v359_v44 = vmul.f32 0.015625, %v311_v43  ;;  %v361_v46 = vmul.f32 0.015625, %v352_v45 }
 0x105   : > { %v313_v47 = vpop.f32.mrf.mxu0  ;;  %v354_v49 = vpop.f32.mrf.mxu1 }
 0x106   : > { %v1007_v48 = vcvt.f32.s32 %v359_v44  ;;  %v1023_v50 = vcvt.f32.s32 %v361_v46  ;;  %v1021_v53 = vand.u32 2147483647, %v361_v46  ;;  %v1005_v55 = vand.u32 2147483647, %v359_v44 }
 0x107   : > { %v315_v51 = vpop.f32.mrf.mxu0  ;;  %v356_v54 = vpop.f32.mrf.mxu1  ;;  %v1026_v57 = vand.u32 2147483648, %v361_v46  ;;  %v1010_v60 = vand.u32 2147483648, %v359_v44  ;;  %v360_v4 = vmul.f32 0.015625, %v313_v47  ;;  %v362_v11 = vmul.f32 0.015625, %v354_v49 }
 0x108   : > { %v1008_v52 = vcvt.s32.f32 %v1007_v48  ;;  %v1024_v56 = vcvt.s32.f32 %v1023_v50  ;;  %vm1022_vm4 = vcmp.lt.f32.partialorder %v1021_v53, 8388608.0  ;;  %vm1006_vm5 = vcmp.lt.f32.partialorder %v1005_v55, 8388608.0 }
 0x109   : > { %v316_v58 = vpop.f32.mrf.mxu0  ;;  %v357_v61 = vpop.f32.mrf.mxu1  ;;  %v1015_v10 = vcvt.f32.s32 %v360_v4  ;;  %v1031_v13 = vcvt.f32.s32 %v362_v11  ;;  %v1018_v16 = vand.u32 2147483648, %v360_v4  ;;  %v1013_v17 = vand.u32 2147483647, %v360_v4 }
 0x10a   : > { %v1009_v59 = vand.u32 2147483647, %v1008_v52  ;;  %v1025_v62 = vand.u32 2147483647, %v1024_v56  ;;  %v1034_v20 = vand.u32 2147483648, %v362_v11 }
 0x10b   : > { %v1016_v12 = vcvt.s32.f32 %v1015_v10  ;;  %v1032_v15 = vcvt.s32.f32 %v1031_v13  ;;  %v1029_v21 = vand.u32 2147483647, %v362_v11  ;;  %vm1014_vm6 = vcmp.lt.f32.partialorder %v1013_v17, 8388608.0 }
 0x10c   : > { %v1011_v63 = vor.u32 %v1010_v60, %v1009_v59  ;;  %v1027_v0 = vor.u32 %v1026_v57, %v1025_v62 }
 0x10d   : > { %v1017_v14 = vand.u32 2147483647, %v1016_v12  ;;  %v1033_v19 = vand.u32 2147483647, %v1032_v15  ;;  %vm1030_vm7 = vcmp.lt.f32.partialorder %v1029_v21, 8388608.0 }
 0x10e   : > { %v1012_v1 = vsel %vm1006_vm5, %v1011_v63, %v359_v44  ;;  %v1028_v6 = vsel %vm1022_vm4, %v1027_v0, %v361_v46  ;;  %v375_v46 = vlaneseq }
 0x10f   : > { %v367_v5 = vmax.f32 %v1012_v1, 0.0  ;;  %v369_v7 = vmax.f32 %v1028_v6, 0.0  ;;  %v1019_v18 = vor.u32 %v1018_v16, %v1017_v14  ;;  %v1035_v23 = vor.u32 %v1034_v20, %v1033_v19 }
 0x110   : > { %v1383_v48 = vand.u32 127, %v375_v46 }
 0x111   : > { %v1297_v8 = vmin.f32 %v367_v5, 96.0  ;;  %v1299_v9 = vmin.f32 %v369_v7, 96.0  ;;  %v1020_v22 = vsel %vm1014_vm6, %v1019_v18, %v360_v4  ;;  %v1036_v25 = vsel %vm1030_vm7, %v1035_v23, %v362_v11 }
 0x112   : > { %v368_v24 = vmax.f32 %v1020_v22, 0.0  ;;  %v370_v27 = vmax.f32 %v1036_v25, 0.0  ;;  %v377_v51 = vadd.s32 128, %v1383_v48  ;;  %v378_v52 = vadd.s32 256, %v1383_v48 }
 0x113   : > { %408 = vrot.lane.b32.xlu1 %v1297_v8, %s1199_s10  ;;  %412 = vrot.lane.b32.xlu0 %v1299_v9, %s1199_s10  ;;  %v379_v57 = vadd.s32 384, %v1383_v48  ;;  %v384_v59 = vshra.s32 %v1383_v48, 4  ;;  %v380_v5 = vand.u32 15, %v1383_v48  ;;  %vm416_vm12 = vcmp.lt.s32.totalorder %v1383_v48, 17 }
 0x114   : > { %v1321_v26 = vmin.f32 %v368_v24, 96.0  ;;  %v1326_v28 = vmin.f32 %v370_v27, 96.0  ;;  %v385_v55 = vshra.s32 %v377_v51, 4  ;;  %v386_v56 = vshra.s32 %v378_v52, 4 }
 0x115   : > { %v381_v60 = vand.u32 15, %v377_v51  ;;  %v382_v0 = vand.u32 15, %v378_v52  ;;  %v387_v1 = vshra.s32 %v379_v57, 4  ;;  %v1400_v6 = vand.u32 15, %v384_v59 }
 0x116   : > { %v1393_v61 = vand.u32 15, %v385_v55  ;;  %v1395_v62 = vand.u32 15, %v386_v56  ;;  %v383_v11 = vand.u32 15, %v379_v57  ;;  %vm1416_vm14 = vcmp.ge.s32.totalorder %v380_v5, 1 }
 0x117   : > { %487 = vrot.lane.b32.xlu1 %v1297_v8, %s1200_s11  ;;  %450 = vrot.lane.b32.xlu0 %v1297_v8, %s1201_s12  ;;  %vm1404_vm10 = vcmp.ge.s32.totalorder %v381_v60, 1  ;;  %vm1408_vm11 = vcmp.ge.s32.totalorder %v382_v0, 1  ;;  %v1413_v12 = vand.u32 15, %v387_v1  ;;  %vm392_vm13 = vcmp.ge.s32.totalorder %v1400_v6, 1 }
 0x118   : > { %vm1811_vm8 = vcmp.ge.s32.totalorder %v1393_v61, 1  ;;  %vm1810_vm9 = vcmp.ge.s32.totalorder %v1395_v62, 1  ;;  %v1421_v15 = vmul.f32 %v567_v34, %v1297_v8  ;;  %v1434_v18 = vmul.f32 %v567_v34, %v1321_v26  ;;  %vm1462_vm4 = vmand %vm392_vm13, %vm1416_vm14 }
 0x119   : > { %vm1429_vm15 = vmand %vm1811_vm8, %vm1404_vm10  ;;  %v1437_v19 = vmul.f32 %v567_v34, %v1299_v9  ;;  %vm458_vm1 = vcmp.lt.s32.totalorder %v1383_v48, 16  ;;  %vm1812_vm2 = vcmp.ge.s32.totalorder %v1413_v12, 1  ;;  %vm1454_vm3 = vcmp.ge.s32.totalorder %v383_v11, 1 }
 0x11a   : > { %vm1443_vm0 = vmand %vm1810_vm9, %vm1408_vm11  ;;  %v1469_v25 = vmul.f32 %v567_v34, %v1326_v28  ;;  %vm1471_vm5 = vcmp.lt.s32.totalorder %v380_v5, 15  ;;  %vm1475_vm6 = vcmp.lt.s32.totalorder %v381_v60, 15  ;;  %vm1486_vm9 = vcmp.lt.s32.totalorder %v382_v0, 15 }
 0x11b   : > { %528 = vrot.lane.b32.xlu1 %v1297_v8, %s1202_s13  ;;  %454 = vrot.lane.b32.xlu0 %v1299_v9, %s1201_s12  ;;  %v1836_v34 = vmov 0  ;;  %vm1496_vm8 = vmand %vm1812_vm2, %vm1454_vm3  ;;  %v1840_v56 = vmov 0 }
 0x11c   : > { %v1837_v34 = vsel %vm1486_vm9, 4294967295, %v1836_v34  ;;  %vm1518_vm7 = vmand %vm392_vm13, %vm1471_vm5 }
 0x11f   : > { %577 = vrot.lane.b32.xlu1 %v1297_v8, %s1203_s14  ;;  %491 = vrot.lane.b32.xlu0 %v1299_v9, %s1200_s11 }
 0x123   : > { %581 = vrot.lane.b32.xlu1 %v1299_v9, %s1203_s14  ;;  %532 = vrot.lane.b32.xlu0 %v1299_v9, %s1202_s13 }
 0x127   : > { %655 = vrot.lane.b32.xlu1 %v1297_v8, %s1204_s17  ;;  %614 = vrot.lane.b32.xlu0 %v1297_v8, %s1205_s18 }
 0x12b   : > { %410 = vrot.lane.b32.xlu1 %v1321_v26, %s1199_s10  ;;  %618 = vrot.lane.b32.xlu0 %v1299_v9, %s1205_s18 }
 0x12f   : > { %414 = vrot.lane.b32.xlu1 %v1326_v28, %s1199_s10  ;;  %659 = vrot.lane.b32.xlu0 %v1299_v9, %s1204_s17 }
 0x133   : > { %452 = vrot.lane.b32.xlu1 %v1321_v26, %s1201_s12  ;;  %579 = vrot.lane.b32.xlu0 %v1321_v26, %s1203_s14 }
 0x137   : > { %456 = vrot.lane.b32.xlu1 %v1326_v28, %s1201_s12  ;;  %583 = vrot.lane.b32.xlu0 %v1326_v28, %s1203_s14 }
 0x13b   : > { %489 = vrot.lane.b32.xlu1 %v1321_v26, %s1200_s11  ;;  %692 = vrot.lane.b32.xlu0 %v1297_v8, %s1206_s19 }
 0x13f   : > { %493 = vrot.lane.b32.xlu1 %v1326_v28, %s1200_s11  ;;  %696 = vrot.lane.b32.xlu0 %v1299_v9, %s1206_s19 }
 0x143   : > { %530 = vrot.lane.b32.xlu1 %v1321_v26, %s1202_s13 }
 0x147   : > { %534 = vrot.lane.b32.xlu1 %v1326_v28, %s1202_s13 }
 0x14b   : > { %616 = vrot.lane.b32.xlu1 %v1321_v26, %s1205_s18 }
 0x14f   : > { %620 = vrot.lane.b32.xlu1 %v1326_v28, %s1205_s18 }
 0x153   : > { %657 = vrot.lane.b32.xlu1 %v1321_v26, %s1204_s17 }
 0x157   : > { %661 = vrot.lane.b32.xlu1 %v1326_v28, %s1204_s17 }
 0x15b   : > { %694 = vrot.lane.b32.xlu1 %v1321_v26, %s1206_s19 }
 0x15f   : > { %698 = vrot.lane.b32.xlu1 %v1326_v28, %s1206_s19 }
 0x185   : > { %v409_v38 = vpop.permute.xlu1 %408  ;;  %v1371_v40 = vpop.permute.xlu0 %412 }
 0x189   : > { %v1369_v39 = vpop.permute.xlu1 %487  ;;  %v451_v42 = vpop.permute.xlu0 %450 }
 0x18d   : > { %v1373_v41 = vpop.permute.xlu1 %528  ;;  %v1379_v45 = vpop.permute.xlu0 %454 }
 0x191   : > { %v1375_v43 = vpop.permute.xlu1 %577  ;;  %v1385_v49 = vpop.permute.xlu0 %491 }
 0x195   : > { %v1377_v44 = vpop.permute.xlu1 %581  ;;  %v1389_v54 = vpop.permute.xlu0 %532 }
 0x199   : > { %v1381_v47 = vpop.permute.xlu1 %655  ;;  %v1397_v63 = vpop.permute.xlu0 %614 }
 0x19d   : > { %v411_v50 = vpop.permute.xlu1 %410  ;;  %v1423_v16 = vpop.permute.xlu0 %618 }
 0x19e   : > { %v419_v20 = vsel %vm416_vm12, %v409_v38, %v411_v50  ;;  %v418_v21 = vsel %vm416_vm12, %v411_v50, %v1371_v40 }
 0x19f   : > { %v434_v50 = vsel %vm1429_vm15, %v419_v20, 0.0  ;;  %vm495_vm15 = vcmp.lt.s32.totalorder %v1383_v48, 15 }
 0x1a0   : > { %v443_v60 = vmul.f32 %v1353_v29, %v434_v50 }
 0x1a1   : > { %v415_v53 = vpop.permute.xlu1 %414  ;;  %v1506_v55 = vpop.permute.xlu0 %659 }
 0x1a2   : > { %v420_v23 = vsel %vm416_vm12, %v415_v53, %v409_v38  ;;  %v435_v38 = vsel %vm1443_vm0, %v418_v21, 0.0  ;;  %v417_v52 = vsel %vm416_vm12, %v1371_v40, %v415_v53  ;;  %vm1508_vm0 = vcmp.lt.s32.totalorder %v383_v11, 15 }
 0x1a3   : > { %v1841_v56 = vsel %vm1508_vm0, 4294967295, %v1840_v56  ;;  %v444_v17 = vmul.f32 %v1353_v29, %v435_v38  ;;  %vm622_vm12 = vcmp.lt.s32.totalorder %v1383_v48, 113 }
 0x1a5   : > { %v453_v58 = vpop.permute.xlu1 %452 }
 0x1a6   : > { %v461_v28 = vsel %vm458_vm1, %v451_v42, %v453_v58  ;;  %v460_v0 = vsel %vm458_vm1, %v453_v58, %v1379_v45  ;;  %v436_v58 = vsel %vm1496_vm8, %v417_v52, 0.0  ;;  %vm1851_vm8 = vcmp.ge.s32.totalorder %v1413_v12, 1 }
 0x1a7   : > { %v445_v22 = vmul.f32 %v1353_v29, %v436_v58 }
 0x1a9   : > { %v457_v4 = vpop.permute.xlu1 %456 }
 0x1aa   : > { %v462_v46 = vsel %vm458_vm1, %v457_v4, %v451_v42  ;;  %v433_v42 = vsel %vm1462_vm4, %v420_v23, 0.0  ;;  %vm1844_vm4 = vcmp.ge.s32.totalorder %v1393_v61, 1  ;;  %v459_v5 = vsel %vm458_vm1, %v1379_v45, %v457_v4 }
 0x1ab   : > { %v471_v57 = vsel %vm392_vm13, %v462_v46, 0.0  ;;  %v472_v1 = vsel %vm1844_vm4, %v461_v28, 0.0  ;;  %vm1845_vm13 = vmmov %vm1844_vm4  ;;  %v442_v8 = vmul.f32 %v1353_v29, %v433_v42  ;;  %vm1848_vm4 = vcmp.ge.s32.totalorder %v1395_v62, 1  ;;  %v580_v42 = vpop.permute.xlu0 %579 }
 0x1ac   : > { %vm1539_vm2 = vmand %vm1845_vm13, %vm1475_vm6  ;;  %v479_v20 = vmul.f32 %v1355_v30, %v471_v57  ;;  %v480_v46 = vmul.f32 %v1355_v30, %v472_v1  ;;  %v474_v50 = vsel %vm1851_vm8, %v459_v5, 0.0 }
 0x1ad   : > { %v490_v13 = vpop.permute.xlu1 %489  ;;  %vm1551_vm1 = vmand %vm1848_vm4, %vm1486_vm9  ;;  %vm397_vm4 = vcmp.lt.s32.totalorder %v1393_v61, 15  ;;  %vm1854_vm9 = vcmp.ge.s32.totalorder %v1395_v62, 1 }
 0x1ae   : > { %v498_v4 = vsel %vm495_vm15, %v1369_v39, %v490_v13  ;;  %v497_v21 = vsel %vm495_vm15, %v490_v13, %v1385_v49  ;;  %vm1566_vm13 = vmand %vm1851_vm8, %vm1508_vm0  ;;  %v473_v13 = vsel %vm1854_vm9, %v460_v0, 0.0  ;;  %vm1855_vm0 = vcmp.lt.s32.totalorder %v1383_v48, 1 }
 0x1af   : > { %vm1857_vm9 = vmmov %vm1855_vm0  ;;  %v514_v57 = vsel %vm1551_vm1, %v497_v21, 0.0  ;;  %v481_v0 = vmul.f32 %v1355_v30, %v473_v13  ;;  %v483_v1 = vadd.f32 %v479_v20, %v442_v8  ;;  %vm396_vm1 = vcmp.lt.s32.totalorder %v1400_v6, 15 }
 0x1b0   : > { %v522_v8 = vmul.f32 %v1357_v31, %v514_v57  ;;  %vm399_vm8 = vcmp.lt.s32.totalorder %v1413_v12, 15 }
 0x1b1   : > { %v494_v24 = vpop.permute.xlu1 %493 }
 0x1b2   : > { %v499_v53 = vsel %vm495_vm15, %v494_v24, %v1369_v39  ;;  %v496_v23 = vsel %vm495_vm15, %v1385_v49, %v494_v24  ;;  %v513_v24 = vsel %vm1539_vm2, %v498_v4, 0.0  ;;  %vm1858_vm15 = vmmov %vm1855_vm0  ;;  %vm1859_vm2 = vcmp.lt.s32.totalorder %v1383_v48, 127 }
 0x1b3   : > { %v512_v39 = vsel %vm1518_vm7, %v499_v53, 0.0  ;;  %vm1856_vm7 = vmmov %vm1855_vm0  ;;  %v515_v40 = vsel %vm1566_vm13, %v496_v23, 0.0  ;;  %v521_v5 = vmul.f32 %v1357_v31, %v513_v24  ;;  %v584_v24 = vpop.permute.xlu0 %583  ;;  %vm398_vm13 = vcmp.lt.s32.totalorder %v1395_v62, 15 }
 0x1b4   : > { %v520_v53 = vmul.f32 %v1357_v31, %v512_v39  ;;  %v523_v20 = vmul.f32 %v1357_v31, %v515_v40  ;;  %v484_v39 = vadd.f32 %v480_v46, %v443_v60 }
 0x1b5   : > { %v531_v59 = vpop.permute.xlu1 %530 }
 0x1b6   : > { %v539_v28 = vsel %vm1855_vm0, %v1373_v41, %v531_v59  ;;  %v538_v38 = vsel %vm1856_vm7, %v531_v59, %v1389_v54  ;;  %vm1860_vm0 = vmmov %vm1859_vm2  ;;  %v524_v13 = vadd.f32 %v520_v53, %v483_v1 }
 0x1b7   : > { %v551_v11 = vsel %vm1408_vm11, %v538_v38, 0.0  ;;  %v588_v23 = vsel %vm1860_vm0, %v1375_v43, %v580_v42  ;;  %v525_v38 = vadd.f32 %v521_v5, %v484_v39  ;;  %vm1636_vm7 = vmand %vm397_vm4, %vm1404_vm10 }
 0x1b8   : > { %v559_v29 = vmul.f32 %v1359_v32, %v551_v11  ;;  %v598_v60 = vsel %vm1471_vm5, %v588_v23, 0.0 }
 0x1b9   : > { %v535_v49 = vpop.permute.xlu1 %534  ;;  %v606_v7 = vmul.f32 %v1363_v35, %v598_v60 }
 0x1ba   : > { %v537_v51 = vsel %vm1857_vm9, %v1389_v54, %v535_v49  ;;  %v540_v52 = vsel %vm1858_vm15, %v535_v49, %v1373_v41  ;;  %v482_v54 = vmul.f32 %v1355_v30, %v474_v50  ;;  %v550_v41 = vsel %vm1404_vm10, %v539_v28, 0.0  ;;  %vm1863_vm15 = vmmov %vm1860_vm0 }
 0x1bb   : > { %v549_v59 = vsel %vm1416_vm14, %v540_v52, 0.0  ;;  %v552_v45 = vsel %vm1454_vm3, %v537_v51, 0.0  ;;  %v587_v30 = vsel %vm1859_vm2, %v580_v42, %v1377_v44  ;;  %v558_v50 = vmul.f32 %v1359_v32, %v550_v41  ;;  %vm1864_vm10 = vmmov %vm1860_vm0 }
 0x1bc   : > { %v557_v4 = vmul.f32 %v1359_v32, %v549_v59  ;;  %v485_v28 = vadd.f32 %v481_v0, %v444_v17  ;;  %v486_v49 = vadd.f32 %v482_v54, %v445_v22  ;;  %v560_v58 = vmul.f32 %v1359_v32, %v552_v45  ;;  %vm1657_vm0 = vmand %vm396_vm1, %vm1416_vm14 }
 0x1bd   : > { %v617_v21 = vpop.permute.xlu1 %616  ;;  %v599_v17 = vsel %vm1475_vm6, %v587_v30, 0.0  ;;  %v562_v42 = vadd.f32 %v558_v50, %v525_v38  ;;  %vm663_vm9 = vcmp.lt.s32.totalorder %v1383_v48, 112  ;;  %v586_v40 = vsel %vm1863_vm15, %v1377_v44, %v584_v24  ;;  %vm1671_vm15 = vmand %vm398_vm13, %vm1408_vm11 }
 0x1be   : > { %v561_v51 = vadd.f32 %v557_v4, %v524_v13  ;;  %v526_v46 = vadd.f32 %v522_v8, %v485_v28  ;;  %v527_v52 = vadd.f32 %v523_v20, %v486_v49  ;;  %v624_v57 = vsel %vm622_vm12, %v617_v21, %v1423_v16  ;;  %v693_v4 = vpop.permute.xlu0 %692  ;;  %vm1688_vm11 = vmand %vm399_vm8, %vm1454_vm3 }
 0x1bf   : > { %vm700_vm2 = vcmp.lt.s32.totalorder %v1383_v48, 111  ;;  %v589_v0 = vsel %vm1864_vm10, %v584_v24, %v1375_v43  ;;  %v625_v44 = vsel %vm622_vm12, %v1397_v63, %v617_v21  ;;  %v607_v5 = vmul.f32 %v1363_v35, %v599_v17  ;;  %vm1726_vm3 = vmand %vm396_vm1, %vm1471_vm5 }
 0x1c0   : > { %v563_v53 = vadd.f32 %v559_v29, %v526_v46  ;;  %v564_v59 = vadd.f32 %v560_v58, %v527_v52  ;;  %v573_v54 = vadd.f32 %v1421_v15, %v561_v51  ;;  %v640_v43 = vsel %vm1636_vm7, %v624_v57, 0.0 }
 0x1c1   : > { %v621_v31 = vpop.permute.xlu1 %620  ;;  %vm1869_vm14 = vnez %v1837_v34  ;;  %v574_v10 = vadd.f32 %v1434_v18, %v562_v42  ;;  %vm1872_vm7 = vnez %v1841_v56  ;;  %v639_v20 = vsel %vm1657_vm0, %v625_v44, 0.0 }
 0x1c2   : > { %v600_v45 = vsel %vm1869_vm14, %v586_v40, 0.0  ;;  %v623_v22 = vsel %vm622_vm12, %v1423_v16, %v621_v31  ;;  %v626_v30 = vsel %vm622_vm12, %v621_v31, %v1397_v63  ;;  %v601_v8 = vsel %vm1872_vm7, %v589_v0, 0.0  ;;  %vm1740_vm12 = vmand %vm397_vm4, %vm1475_vm6  ;;  %v697_v26 = vpop.permute.xlu0 %696 }
 0x1c3   : > { %v575_v18 = vadd.f32 %v1437_v19, %v563_v53  ;;  %v576_v9 = vadd.f32 %v1469_v25, %v564_v59  ;;  %v610_v23 = vadd.f32 %v606_v7, %v573_v54  ;;  %v648_v39 = vmul.f32 %v1361_v33, %v640_v43  ;;  %vm1760_vm5 = vmand %vm398_vm13, %vm1869_vm14 }
 0x1c4   : > { %v641_v50 = vsel %vm1671_vm15, %v623_v22, 0.0  ;;  %v642_v19 = vsel %vm1688_vm11, %v626_v30, 0.0  ;;  %v608_v49 = vmul.f32 %v1363_v35, %v600_v45  ;;  %v609_v29 = vmul.f32 %v1363_v35, %v601_v8  ;;  %vm708_vm6 = vmand %vm399_vm8, %vm1872_vm7 }
 0x1c5   : > { %v658_v41 = vpop.permute.xlu1 %657  ;;  %v611_v58 = vadd.f32 %v607_v5, %v574_v10  ;;  %v647_v24 = vmul.f32 %v1361_v33, %v639_v20  ;;  %v649_v46 = vmul.f32 %v1361_v33, %v641_v50  ;;  %v650_v52 = vmul.f32 %v1361_v33, %v642_v19 }
 0x1c6   : > { %v665_v15 = vsel %vm663_vm9, %v658_v41, %v1506_v55  ;;  %v666_v11 = vsel %vm663_vm9, %v1381_v47, %v658_v41  ;;  %v612_v60 = vadd.f32 %v608_v49, %v575_v18  ;;  %v613_v32 = vadd.f32 %v609_v29, %v576_v9 }
 0x1c7   : > { %v676_v16 = vsel %vm396_vm1, %v666_v11, 0.0  ;;  %v677_v13 = vsel %vm397_vm4, %v665_v15, 0.0  ;;  %v652_v31 = vadd.f32 %v648_v39, %v611_v58  ;;  %v651_v42 = vadd.f32 %v647_v24, %v610_v23 }
 0x1c8   : > { %v685_v51 = vmul.f32 %v1365_v36, %v677_v13  ;;  %v653_v1 = vadd.f32 %v649_v46, %v612_v60  ;;  %v654_v44 = vadd.f32 %v650_v52, %v613_v32 }
 0x1c9   : > { %v662_v63 = vpop.permute.xlu1 %661 }
 0x1ca   : > { %v664_v25 = vsel %vm663_vm9, %v1506_v55, %v662_v63  ;;  %v667_v28 = vsel %vm663_vm9, %v662_v63, %v1381_v47  ;;  %v684_v55 = vmul.f32 %v1365_v36, %v676_v16  ;;  %v689_v0 = vadd.f32 %v685_v51, %v652_v31 }
 0x1cb   : > { %v678_v47 = vsel %vm398_vm13, %v664_v25, 0.0  ;;  %v679_v35 = vsel %vm399_vm8, %v667_v28, 0.0  ;;  %vm757_vm8 = vcmask 1043456  }
 0x1cc   : > { %v686_v27 = vmul.f32 %v1365_v36, %v678_v47  ;;  %v687_v40 = vmul.f32 %v1365_v36, %v679_v35  ;;  %v688_v7 = vadd.f32 %v684_v55, %v651_v42 }
 0x1cd   : > { %v695_v17 = vpop.permute.xlu1 %694 }
 0x1ce   : > { %v702_v57 = vsel %vm700_vm2, %v695_v17, %v697_v26  ;;  %v703_v61 = vsel %vm700_vm2, %v693_v4, %v695_v17  ;;  %v690_v14 = vadd.f32 %v686_v27, %v653_v1  ;;  %v691_v15 = vadd.f32 %v687_v40, %v654_v44 }
 0x1cf   : > { %v717_v53 = vsel %vm1726_vm3, %v703_v61, 0.0  ;;  %v718_v59 = vsel %vm1740_vm12, %v702_v57, 0.0 }
 0x1d0   : > { %v725_v54 = vmul.f32 %v1367_v37, %v717_v53  ;;  %v726_v36 = vmul.f32 %v1367_v37, %v718_v59 }
 0x1d1   : > { %v699_v34 = vpop.permute.xlu1 %698 }
 0x1d2   : > { %v729_v41 = vadd.f32 %v725_v54, %v688_v7  ;;  %v730_v62 = vadd.f32 %v726_v36, %v689_v0  ;;  %v701_v5 = vsel %vm700_vm2, %v697_v26, %v699_v34  ;;  %v704_v43 = vsel %vm700_vm2, %v699_v34, %v693_v4  ;;  %v241_v0 = vld [vmem:[%s1275_s9] sm:$0x3] }
 0x1d3   : > { %v719_v11 = vsel %vm1760_vm5, %v701_v5, 0.0  ;;  %v720_v56 = vsel %vm708_vm6, %v704_v43, 0.0  ;;  %vm753_vm2 = vcmask 64512   ;;  %v858_v34 = vcombine.high %v1279_v2, %v1279_v2 }
 0x1d4   : > { %v733_v45 = vmul.f32 0.015625, %v729_v41  ;;  %v734_v12 = vmul.f32 0.015625, %v730_v62  ;;  %v727_v10 = vmul.f32 %v1367_v37, %v719_v11  ;;  %v728_v21 = vmul.f32 %v1367_v37, %v720_v56 }
 0x1d5   : > { %v859_v56 = vcombine.high %v1281_v3, %v1281_v3 }
 0x1d6   : > { %v1047_v22 = vcvt.f32.s32 %v734_v12  ;;  %v731_v30 = vadd.f32 %v727_v10, %v690_v14  ;;  %v732_v8 = vadd.f32 %v728_v21, %v691_v15  ;;  %v1039_v18 = vcvt.f32.s32 %v733_v45 }
 0x1d7   : > { %v1045_v4 = vand.u32 2147483647, %v734_v12  ;;  %v1037_v23 = vand.u32 2147483647, %v733_v45  ;;  %v1050_v16 = vand.u32 2147483648, %v734_v12  ;;  %v1042_v19 = vand.u32 2147483648, %v733_v45 }
 0x1d8   : > { %v1048_v9 = vcvt.s32.f32 %v1047_v22  ;;  %v735_v20 = vmul.f32 0.015625, %v731_v30  ;;  %v736_v48 = vmul.f32 0.015625, %v732_v8  ;;  %v1040_v39 = vcvt.s32.f32 %v1039_v18 }
 0x1d9   : > { %vm1046_vm4 = vcmp.lt.f32.partialorder %v1045_v4, 8388608.0  ;;  %vm1038_vm1 = vcmp.lt.f32.partialorder %v1037_v23, 8388608.0 }
 0x1da   : > { %v1063_v13 = vcvt.f32.s32 %v736_v48  ;;  %v1049_v63 = vand.u32 2147483647, %v1048_v9  ;;  %v1041_v50 = vand.u32 2147483647, %v1040_v39  ;;  %v1055_v25 = vcvt.f32.s32 %v735_v20 }
 0x1db   : > { %v1061_v29 = vand.u32 2147483647, %v736_v48  ;;  %v1066_v24 = vand.u32 2147483648, %v736_v48  ;;  %v1053_v51 = vand.u32 2147483647, %v735_v20  ;;  %v1058_v26 = vand.u32 2147483648, %v735_v20 }
 0x1dc   : > { %v1064_v28 = vcvt.s32.f32 %v1063_v13  ;;  %v1051_v49 = vor.u32 %v1050_v16, %v1049_v63  ;;  %v1043_v37 = vor.u32 %v1042_v19, %v1041_v50  ;;  %v1056_v58 = vcvt.s32.f32 %v1055_v25 }
 0x1dd   : > { %vm1062_vm13 = vcmp.lt.f32.partialorder %v1061_v29, 8388608.0  ;;  %vm1054_vm9 = vcmp.lt.f32.partialorder %v1053_v51, 8388608.0 }
 0x1de   : > { %v1052_v38 = vsel %vm1046_vm4, %v1051_v49, %v734_v12  ;;  %v1065_v55 = vand.u32 2147483647, %v1064_v28  ;;  %v1044_v35 = vsel %vm1038_vm1, %v1043_v37, %v733_v45  ;;  %v1057_v6 = vand.u32 2147483647, %v1056_v58 }
 0x1df   : > { %v742_v47 = vmax.f32 %v1052_v38, 0.0  ;;  %v741_v31 = vmax.f32 %v1044_v35, 0.0 }
 0x1e0   : > { %v1067_v60 = vor.u32 %v1066_v24, %v1065_v55  ;;  %v1059_v52 = vor.u32 %v1058_v26, %v1057_v6 }
 0x1e1   : > { %v746_v46 = vmin.f32 %v742_v47, 96.0  ;;  %v745_v17 = vmin.f32 %v741_v31, 96.0 }
 0x1e2   : > { %v1068_v42 = vsel %vm1062_vm13, %v1067_v60, %v736_v48  ;;  %v1060_v61 = vsel %vm1054_vm9, %v1059_v52, %v735_v20 }
 0x1e3   : > { %v750_v32 = vpack.c.bf16 %v746_v46, %v746_v46  ;;  %v744_v57 = vmax.f32 %v1068_v42, 0.0  ;;  %v749_v27 = vpack.c.bf16 %v745_v17, %v745_v17  ;;  %v743_v40 = vmax.f32 %v1060_v61, 0.0 }
 0x1e5   : > { %980 = vmatprep.subr.msk.bf16.mxu0 %vm757_vm8, %v750_v32  ;;  %v748_v53 = vmin.f32 %v744_v57, 96.0  ;;  %v759_v59 = vsel %vm757_vm8, %v749_v27, 0  ;;  %v747_v33 = vmin.f32 %v743_v40, 96.0 }
 0x1e6   : > { %785 = vmatpush1.bf16.msra.mxu0 %v759_v59 }
 0x1e7   : > { %v752_v7 = vpack.c.bf16 %v748_v53, %v748_v53  ;;  %v751_v54 = vpack.c.bf16 %v747_v33, %v747_v33 }
 0x1e9   : > { %982 = vmatprep.subr.msk.bf16.mxu1 %vm757_vm8, %v752_v7  ;;  %v765_v36 = vsel %vm757_vm8, %v751_v54, 0  ;;  %981 = vmatmul.mubr.msk.bf16.vlgmr.msra.gmra.mxu0 %vm753_vm2, %v241_v0 }
 0x1ea   : > { %826 = vmatpush1.bf16.msra.mxu1 %v765_v36 }
 0x1ed   : > { %983 = vmatmul.mubr.msk.bf16.vlgmr.msra.gmra.mxu1 %vm753_vm2, %v241_v0 }
 0x2a9   : > { %v804_v1 = vpop.f32.mrf.mxu0 }
 0x2aa   : > { %v852_v44 = vmul.f32 0.0009765625, %v804_v1 }
 0x2ab   : > { %v806_v41 = vpop.f32.mrf.mxu0 }
 0x2ac   : > { %v862_v62 = vadd.f32 %v852_v44, %v1279_v2  ;;  %v853_v5 = vmul.f32 0.0009765625, %v806_v41 }
 0x2ad   : > { %v845_v43 = vpop.f32.mrf.mxu1  ;;  %v808_v14 = vpop.f32.mrf.mxu0 }
 0x2ae   : > { %v854_v15 = vmul.f32 0.0009765625, %v845_v43  ;;  %v863_v11 = vadd.f32 %v858_v34, %v853_v5 }
 0x2af   : > { %v847_v45 = vpop.f32.mrf.mxu1  ;;  %v809_v12 = vpop.f32.mrf.mxu0 }
 0x2b0   : > { %v870_v10 = vcombine.low %v862_v62, %v863_v11  ;;  %v855_v21 = vmul.f32 0.0009765625, %v847_v45  ;;  %v864_v30 = vadd.f32 %v854_v15, %v1281_v3 }
 0x2b1   : > { %v849_v22 = vpop.f32.mrf.mxu1 }
 0x2b2   : > { %874 = vst [vmem:[#allocation2] sm:$0xff] %v870_v10  ;;  %v865_v8 = vadd.f32 %v859_v56, %v855_v21  ;;  %879 = sbr.rel (%p984_p2) target bundleno = 703 (0x2bf), region = 48 }
 0x2b3   : > { %v850_v18 = vpop.f32.mrf.mxu1 }
 0x2b4   : > { %v871_v9 = vcombine.low %v864_v30, %v865_v8 }
 0x2b6   : > { %875 = vst [vmem:[#allocation2 + $0x8] sm:$0xff] %v871_v9 }
 0x2b9   : > { %v880_v2 = vld [vmem:[#allocation2] sm:$0xff] }
 0x2ba   : > { %882 = vst [vmem:[#allocation6] sm:$0xff] %v880_v2 }
 0x2bd   : > { %v881_v20 = vld [vmem:[#allocation2 + $0x8] sm:$0xff] }
 0x2be   : > { %883 = vst [vmem:[#allocation6 + $0x8] sm:$0xff] %v881_v20 }
 0x2bf PF: > { %p1083_p3 = scmp.eq.s32.totalorder %s1239_s16, 3  ;;  %s1207_s20 = smov [#allocation6]  }
 0x2c0   : > { %s891_s21 = sshll.u32 %s1207_s20, 4  ;;  %s892_s21 = int_to_ptr.vmem [resolvable:$true] %s891_s21 }
 0x2c1   : > { %s1149_s22 = scalar_lea.vmem %s892_s21, 256  ;;  %p1156_p7 = scmp.lt.s32.totalorder %s892_s21, %s892_s21 }
 0x2c2   : > { %p1150_p4 = scmp.ne.s32.totalorder %s892_s21, %s1149_s22  ;;  %p1157_p8 = scmp.lt.s32.totalorder %s1149_s22, %s1149_s22 }
 0x2c4   : > { %p1151_p5 = pnand %p1150_p4, %p1083_p3  ;;  %p1158_p9 = por %p1157_p8, %p1156_p7 }
 0x2c6   : > { %p1152_p6 = pneg %p1151_p5 }
 0x2c8   : > { %p1159_p10 = pnand %p1158_p9, %p1152_p6 }
 0x2ca   : > { %1162 = shalt.err (!%p1159_p10)
}
 0x2cb   : > { %1074 = dma.vmem_to_hbm [thread:$0]  (%p1083_p3), %s892_s21, 256, %s1809_s4, [#allocation5]  }
 0x2cc   : > { %1182 = dma.done.wait (%p1083_p3), [#allocation5], 256  }
 0x2cd   : > { %1184 = vsyncadd (%p1083_p3), [#allocation5], 4294967040 }
 0x2ce PF: > { %s16_s15 = sadd.s32 1, %s1187_s15  }
 0x2cf   : > { %p13_p11 = scmp.ge.s32.totalorder %s16_s15, 6  }
 0x2d1   :  { %15 = sbr.rel (!%p13_p11) target bundleno = 2 (0x2), region = 82 }
 0x2d6   :  { %904 = vsyncpa [#allocation4], 1 }
 0x2d7   :  { %906 = vsyncpa [#allocation4 + $0x1], 1 }
 0x2d8   :  { %907 = vsyncpa [#allocation5], 1 }
 0x2d9   :  { %909 = vsyncpa [#allocation5 + $0x1], 1 }

</bundles_post_ra>
